<compile_context>
chip_gen: v6e
topology: v6e:2x2x1
jax: 0.10.0
libtpu: 0.0.40
codegen_flags: <defaults>
</compile_context>

<pallas_src>
import jax
import jax.numpy as jnp
from jax.experimental import pallas as pl
from jax.experimental.pallas import tpu as pltpu


def _conv_bn_lrelu_kernel(a_ref, w_ref, shift_ref, o_ref):
    # a_ref:     (tm, Kp)   bf16 im2col patch tile
    # w_ref:     (Kp, OCp)  bf16 conv weight with BN scale pre-folded
    # shift_ref: (1, OCp)   f32  folded BN shift (+ conv bias)
    # o_ref:     (tm, OCp)  f32  lane-dense output tile
    acc = jnp.dot(a_ref[...], w_ref[...], preferred_element_type=jnp.float32)
    y = acc + shift_ref[...]
    o_ref[...] = jnp.where(y > 0, y, 0.1 * y).astype(o_ref.dtype)


def _round_up(x, m):
    return pl.cdiv(x, m) * m


def convolutional_layer_forward(x, weight, bias, gamma, beta,
                                running_mean, running_var,
                                stride, padding, eps=1e-5, tm_max=512):
    """x: [B, C, H, W] float32 (NCHW). Returns [B, OC, OH, OW] float32."""
    B, C, H, W = x.shape
    OC, _, KH, KW = weight.shape
    OH = (H + 2 * padding - KH) // stride + 1
    OW = (W + 2 * padding - KW) // stride + 1
    M = B * OH * OW
    Kdim = C * KH * KW

    # ---- fold BN (+ optional conv bias) into weight / shift -------------
    scale = gamma / jnp.sqrt(running_var + eps)                       # [OC]
    shift = beta - running_mean * scale                               # [OC]
    if bias is not None:
        shift = shift + bias * scale
    w_folded = weight.astype(jnp.float32) * scale[:, None, None, None]

    # ---- im2col in NHWC (bf16); K ordering = (kh, kw, c) -----------------
    x_nhwc = jnp.transpose(x, (0, 2, 3, 1)).astype(jnp.bfloat16)      # [B,H,W,C]
    xp = jnp.pad(x_nhwc,
                 ((0, 0), (padding, padding), (padding, padding), (0, 0)))
    cols = []
    for kh in range(KH):
        for kw in range(KW):
            cols.append(xp[:, kh:kh + stride * OH:stride,
                               kw:kw + stride * OW:stride, :])        # [B,OH,OW,C]
    A = jnp.concatenate(cols, axis=-1).reshape(M, Kdim)               # bf16

    # weight [OC,C,KH,KW] -> [KH,KW,C,OC] -> [K, OC]  (matches A's K order)
    Wm = jnp.transpose(w_folded, (2, 3, 1, 0)).reshape(Kdim, OC)

    # ---- lane/sublane friendly padding ----------------------------------
    Kp = _round_up(Kdim, 128)     # full-lane contraction feed
    OCp = _round_up(OC, 128)      # lane-dense output -> unmasked vst
    tm = tm_max
    while tm > 128 and pl.cdiv(M, tm) < 2:   # keep >=2 grid steps (v7x: 2 TCs)
        tm //= 2
    Mp = _round_up(M, tm)

    A_pad = jnp.pad(A, ((0, Mp - M), (0, Kp - Kdim)))
    W_pad = jnp.pad(Wm, ((0, Kp - Kdim), (0, OCp - OC))).astype(jnp.bfloat16)
    shift_pad = jnp.pad(shift.astype(jnp.float32).reshape(1, OC),
                        ((0, 0), (0, OCp - OC)))

    # ---- explicit VMEM budget (respects v7x's 64 MiB) --------------------
    vmem_est = (2 * tm * Kp * 2        # double-buffered A tiles (bf16)
                + 2 * Kp * OCp * 2     # weight tile (bf16)
                + 2 * OCp * 4          # shift
                + 2 * tm * OCp * 4)    # double-buffered output tiles (f32)
    vmem_limit = int(min(max(4 * vmem_est, 8 << 20), 32 << 20))

    out = pl.pallas_call(
        _conv_bn_lrelu_kernel,
        out_shape=jax.ShapeDtypeStruct((Mp, OCp), jnp.float32),
        grid_spec=pltpu.PrefetchScalarGridSpec(
            num_scalar_prefetch=0,
            grid=(Mp // tm,),
            in_specs=[
                pl.BlockSpec((tm, Kp), lambda i: (i, 0)),     # patch tile
                pl.BlockSpec((Kp, OCp), lambda i: (0, 0)),    # folded weight
                pl.BlockSpec((1, OCp), lambda i: (0, 0)),     # shift
            ],
            out_specs=pl.BlockSpec((tm, OCp), lambda i: (i, 0)),
        ),
        compiler_params=pltpu.CompilerParams(
            dimension_semantics=("parallel",),
            vmem_limit_bytes=vmem_limit),
    )(A_pad, W_pad, shift_pad)

    out = out[:M, :OC].reshape(B, OH, OW, OC).transpose(0, 3, 1, 2)   # -> NCHW
    return out


def _reference(x, weight, bias, gamma, beta, running_mean, running_var,
               stride, padding, eps=1e-5):
    """Full-f32 PyTorch-equivalent reference."""
    y = jax.lax.conv_general_dilated(
        x, weight, window_strides=(stride, stride),
        padding=((padding, padding), (padding, padding)),
        dimension_numbers=('NCHW', 'OIHW', 'NCHW'),
        precision=jax.lax.Precision.HIGHEST)
    if bias is not None:
        y = y + bias[None, :, None, None]
    y = (y - running_mean[None, :, None, None]) / jnp.sqrt(
        running_var[None, :, None, None] + eps)
    y = y * gamma[None, :, None, None] + beta[None, :, None, None]
    return jnp.where(y > 0, y, 0.1 * y)


def _reference_bf16_operands(x, weight, bias, gamma, beta, running_mean,
                             running_var, stride, padding, eps=1e-5):
    """Reference using the same bf16-rounded operands the kernel sees
    (only f32 accumulation order differs)."""
    scale = gamma / jnp.sqrt(running_var + eps)
    shift = beta - running_mean * scale
    if bias is not None:
        shift = shift + bias * scale
    w_q = (weight.astype(jnp.float32) * scale[:, None, None, None]
           ).astype(jnp.bfloat16).astype(jnp.float32)
    x_q = x.astype(jnp.bfloat16).astype(jnp.float32)
    y = jax.lax.conv_general_dilated(
        x_q, w_q, window_strides=(stride, stride),
        padding=((padding, padding), (padding, padding)),
        dimension_numbers=('NCHW', 'OIHW', 'NCHW'),
        precision=jax.lax.Precision.HIGHEST)
    y = y + shift[None, :, None, None]
    return jnp.where(y > 0, y, 0.1 * y)


if __name__ == "__main__":
    # ConvolutionalLayer(in_channels=4, out_channels=8, kernal_size=3, stride=1, padding=1)
    B, C, H, W = 2, 4, 16, 16
    OC, KH, KW = 8, 3, 3
    stride, padding = 1, 1

    key = jax.random.PRNGKey(0)
    k1, k2, k3, k4, k5, k6, k7 = jax.random.split(key, 7)
    x = jax.random.normal(k1, (B, C, H, W), jnp.float32)
    weight = jax.random.normal(k2, (OC, C, KH, KW), jnp.float32) * 0.1
    bias = jax.random.normal(k3, (OC,), jnp.float32) * 0.1
    gamma = 1.0 + 0.1 * jax.random.normal(k4, (OC,), jnp.float32)
    beta = 0.1 * jax.random.normal(k5, (OC,), jnp.float32)
    running_mean = 0.1 * jax.random.normal(k6, (OC,), jnp.float32)
    running_var = 0.5 + jnp.abs(jax.random.normal(k7, (OC,), jnp.float32))

    out = convolutional_layer_forward(
        x, weight, bias, gamma, beta, running_mean, running_var,
        stride, padding)
    out = jax.block_until_ready(out)
    assert out.shape == (B, OC, H, W), out.shape

    # Tight check: same bf16-rounded operands, f32 accumulation.
    ref_q = _reference_bf16_operands(x, weight, bias, gamma, beta,
                                     running_mean, running_var,
                                     stride, padding)
    err_q = float(jnp.max(jnp.abs(out - ref_q)))
    assert jnp.allclose(out, ref_q, rtol=1e-3, atol=1e-3), err_q

    # Fidelity check vs full-f32 reference (difference is bf16 operand
    # rounding of the MXU inputs).
    ref = _reference(x, weight, bias, gamma, beta, running_mean, running_var,
                     stride, padding)
    err = float(jnp.max(jnp.abs(out - ref)))
    assert jnp.allclose(out, ref, rtol=5e-2, atol=5e-2), err

    print("KERNEL_OK")
</pallas_src>

<mosaic_0001>
module attributes {stable_mosaic.version = 11 : i64} {
  func.func @_conv_bn_lrelu_kernel(%arg0: i32, %arg1: memref<256x128xbf16, #tpu.memory_space<vmem>>, %arg2: memref<128x128xbf16, #tpu.memory_space<vmem>>, %arg3: memref<1x128xf32, #tpu.memory_space<vmem>>, %arg4: memref<256x128xf32, #tpu.memory_space<vmem>>) attributes {dimension_semantics = [#tpu.dimension_semantics<parallel>], iteration_bounds = array<i64: 2>, scalar_prefetch = 0 : i64, scratch_operands = 0 : i64, tpu.core_type = #tpu.core_type<tc>, window_params = [{transform_indices = @transform_0, window_bounds = array<i64: 256, 128>}, {pipeline_mode = #tpu.pipeline_mode<synchronous>, transform_indices = @transform_1, window_bounds = array<i64: 128, 128>}, {pipeline_mode = #tpu.pipeline_mode<synchronous>, transform_indices = @transform_2, window_bounds = array<i64: 1, 128>}, {transform_indices = @transform_3, window_bounds = array<i64: 256, 128>}]} {
    %c0 = arith.constant 0 : index
    %c0_0 = arith.constant 0 : index
    %0 = vector.load %arg1[%c0, %c0_0] : memref<256x128xbf16, #tpu.memory_space<vmem>>, vector<256x128xbf16>
    %c0_1 = arith.constant 0 : index
    %c0_2 = arith.constant 0 : index
    %1 = vector.load %arg2[%c0_1, %c0_2] : memref<128x128xbf16, #tpu.memory_space<vmem>>, vector<128x128xbf16>
    %cst = arith.constant dense<0.000000e+00> : vector<256x128xf32>
    %2 = tpu.matmul %0, %1, %cst {dimension_numbers = #tpu.dot_dimension_numbers<[1], [0], [0], [1], [0, 0, 1, 1], [], []>} : vector<256x128xbf16>, vector<128x128xbf16>, vector<256x128xf32> -> vector<256x128xf32>
    %c0_3 = arith.constant 0 : index
    %c0_4 = arith.constant 0 : index
    %3 = vector.load %arg3[%c0_3, %c0_4] : memref<1x128xf32, #tpu.memory_space<vmem>>, vector<1x128xf32>
    %4 = vector.broadcast %3 : vector<1x128xf32> to vector<256x128xf32>
    %5 = arith.addf %2, %4 : vector<256x128xf32>
    %cst_5 = arith.constant 0.000000e+00 : f32
    %6 = vector.broadcast %cst_5 : f32 to vector<256x128xf32>
    %7 = arith.cmpf ogt, %5, %6 : vector<256x128xf32>
    %cst_6 = arith.constant 1.000000e-01 : f32
    %8 = vector.broadcast %cst_6 : f32 to vector<256x128xf32>
    %9 = arith.mulf %8, %5 : vector<256x128xf32>
    %10 = arith.select %7, %5, %9 : vector<256x128xi1>, vector<256x128xf32>
    %c0_7 = arith.constant 0 : index
    %c0_8 = arith.constant 0 : index
    %11 = vector.load %arg4[%c0_7, %c0_8] : memref<256x128xf32, #tpu.memory_space<vmem>>, vector<256x128xf32>
    tpu.vector_store %arg4[%c0_7, %c0_8], %10 {strides = array<i32>} : memref<256x128xf32, #tpu.memory_space<vmem>>, vector<256x128xf32>,
    return
  }
  func.func @transform_0(%arg0: i32) -> (i32, i32) {
    %c0_i32 = arith.constant 0 : i32
    %c0_i32_0 = arith.constant 0 : i32
    return %arg0, %c0_i32 : i32, i32
  }
  func.func @transform_1(%arg0: i32) -> (i32, i32) {
    %c0_i32 = arith.constant 0 : i32
    %c0_i32_0 = arith.constant 0 : i32
    %c0_i32_1 = arith.constant 0 : i32
    return %c0_i32, %c0_i32_0 : i32, i32
  }
  func.func @transform_2(%arg0: i32) -> (i32, i32) {
    %c0_i32 = arith.constant 0 : i32
    %c0_i32_0 = arith.constant 0 : i32
    %c0_i32_1 = arith.constant 0 : i32
    return %c0_i32, %c0_i32_0 : i32, i32
  }
  func.func @transform_3(%arg0: i32) -> (i32, i32) {
    %c0_i32 = arith.constant 0 : i32
    %c0_i32_0 = arith.constant 0 : i32
    return %arg0, %c0_i32 : i32, i32
  }
}

</mosaic_0001>

<bundles_post_ra>
// kernel: tpu_custom_call.1
= control target key start
LH: loop header
LB: loop body
LE: loop exit
PB: predicated region body
PF: predicated region fallthrough
CT: control target
= control target key end

     0   :  { %8 = vsyncpa [#allocation3], 0  ;;  %s1433_s0 = inlined_call_operand.hbm [shape: bf16[512,128], index: 0, kind: input, shape index: {}]   ;;  %s1434_s1 = inlined_call_operand.hbm [shape: bf16[128,128], index: 1, kind: input, shape index: {}]   ;;  %s1435_s2 = inlined_call_operand.vmem [shape: f32[1,128], index: 2, kind: input, shape index: {}]   ;;  %s1436_s3 = inlined_call_operand.hbm [shape: f32[512,128], index: 3, kind: output, shape index: {}]  }
   0x1   :  { %10 = vsyncpa [#allocation3 + $0x1], 0 }
   0x2   :  { %11 = vsyncpa [#allocation6], 0 }
   0x3   :  { %12 = vsyncpa [#allocation4], 0 }
   0x4   :  { %14 = vsyncpa [#allocation4 + $0x1], 0  ;;  %s1159_s12 = smov 0   ;;  %s1161_s13 = smov 0  }
   0x5   :  { %s1163_s14 = smov 0   ;;  %s1165_s15 = smov 0  }
   0x6 LB: > { %s1180_s16 = sadd.s32 4294967295, %s1130_s15   ;;  %s792_s17 = sadd.s32 4294967294, %s1130_s15   ;;  %s1130_s15 = sphi %s1165_s15, %s1458_s15   ;;  %s1126_s14 = sphi %s1163_s14, %s1457_s14   ;;  %s1122_s13 = sphi %s1161_s13, %s1456_s13   ;;  %s1118_s12 = sphi %s1159_s12, %s1455_s12  }
   0x7   : > { %p40_p0 = scmp.ne.s32.totalorder %s1122_s13, %s1118_s12  ;;  %p1437_p1 = scmp.eq.s32.totalorder %s1180_s16, 0 }
   0x8   : > { %p112_p3 = scmp.eq.s32.totalorder %s792_s17, 1  ;;  %p793_p5 = scmp.ge.s32.totalorder %s1130_s15, 1 }
   0x9   : > { %p1189_p4 = por %p1437_p1, %p40_p0  ;;  %p119_p7 = scmp.lt.s32.totalorder %s1130_s15, 3 }
   0xa   : > { %p1194_p6 = por %p112_p3, %p40_p0  ;;  %s1132_s21 = smov [#allocation5]  }
   0xb   : > { %s1441_s18 = scalar_select %p1189_p4, 1, 0 }
   0xc   : > { %s1442_s19 = scalar_select %p1194_p6, 1, 0 }
   0xd   : > { %p1199_p8 = pnand %p793_p5, %p119_p7  ;;  %s131_s22 = sshll.u32 %s1132_s21, 4  ;;  %s132_s22 = int_to_ptr.vmem [resolvable:$true] %s131_s22 }
   0xe   : > { %s1213_s24 = sadd.s32 1, %s1130_s15   ;;  %s27_s25 = sadd.s32 1, %s1126_s14 }
   0xf   : > { %s1443_s20 = scalar_select %p1199_p8, 1, 0 }
  0x10   : > { %p931_p9 = pneg %p1199_p8  ;;  %s24_s26 = ssub.s32 %s1130_s15, %s1213_s24 }
  0x11   : > { %s1019_s27 = scalar_lea.vmem %s132_s22, 1024  ;;  %p1027_p5 = scmp.lt.s32.totalorder %s132_s22, %s132_s22 }
  0x12   : > { %p1208_p11 = pnand %p931_p9, %p1437_p1  ;;  %p1020_p13 = scmp.ne.s32.totalorder %s132_s22, %s1019_s27 }
  0x13   : > { %p1028_p7 = scmp.lt.s32.totalorder %s1019_s27, %s1019_s27 }
  0x14   : > { %p1010_p12 = pneg %p1208_p11 }
  0x15   : > { %p1029_p10 = por %p1028_p7, %p1027_p5 }
  0x16   : > { %p1022_p0 = pnand %p1020_p13, %p1010_p12 }
  0x18   : > { %p1023_p3 = pneg %p1022_p0 }
  0x1a   : > { %p1030_p2 = pnand %p1029_p10, %p1023_p3 }
  0x1c   : > { %1033 = shalt.err (!%p1030_p2)
}
  0x1d   : > { %s1133_s28 = smov 64   ;;  %s1134_s29 = smov 4  }
  0x1e   : > { %934 = dma.hbm_to_vmem [thread:$0]  (!%p1208_p11), %s1434_s1, 1024, %s132_s22, [#allocation6], %s1133_s28, %s1133_s28, %s1134_s29  }
  0x1f   : > { %p25_p2 = scmp.eq.s32.totalorder %s24_s26, 0  ;;  %p34_p9 = scmp.ne.s32.totalorder %s1126_s14, %s1122_s13 }
  0x20   : > { %p35_p10 = scmp.eq.s32.totalorder %s1130_s15, 0  ;;  %p944_p12 = scmp.lt.s32.totalorder %s1130_s15, 2 }
  0x21   : > { %s1233_s5 = scalar_select %p25_p2, %s1126_s14, %s27_s25  }
  0x22   : > { %p36_p13 = por %p35_p10, %p34_p9  ;;  %p1445_p0 = scmp.eq.s32.totalorder %s1180_s16, 1 }
  0x23   : > { %s148_s7 = sand.u32 1, %s1126_s14   ;;  %s833_s8 = sshll.u32 %s1130_s15, 11 }
  0x24   : > { %p1237_p3 = por %p1445_p0, %p34_p9  ;;  %s796_s9 = sshll.u32 %s148_s7, 7 }
  0x25   : > { %s1246_s17 = scalar_lea.hbm %s1433_s0, %s833_s8  ;;  %s152_s21 = scalar_lea.vmem [#allocation2], %s796_s9 }
  0x26   : > { %s1446_s6 = scalar_select %p1237_p3, 1, 0 }
  0x27   : > { %s159_s22 = sshll.u32 %s152_s21, 4  ;;  %p1248_p11 = pnand %p944_p12, %p36_p13  ;;  %s1252_s22 = int_to_ptr.vmem [resolvable:$true] %s159_s22 }
  0x28   : > { %s1254_s25 = scalar_lea.sflag [#allocation3], %s148_s7  ;;  %s1034_s26 = scalar_lea.hbm %s1246_s17, 2048 }
  0x29   : > { %p1035_p5 = scmp.ne.s32.totalorder %s1246_s17, %s1034_s26  ;;  %p1036_p7 = pneg %p1248_p11 }
  0x2a   : > { %s1039_s4 = scalar_lea.hbm %s1433_s0, 4096  ;;  %p1040_p10 = scmp.lt.s32.totalorder %s1246_s17, %s1433_s0 }
  0x2b   : > { %p1037_p2 = pnand %p1036_p7, %p1035_p5  ;;  %p1041_p12 = scmp.lt.s32.totalorder %s1039_s4, %s1034_s26 }
  0x2d   : > { %p1038_p9 = pneg %p1037_p2  ;;  %p1042_p13 = por %p1041_p12, %p1040_p10 }
  0x2f   : > { %p1043_p0 = pnand %p1042_p13, %p1038_p9 }
  0x31   : > { %1046 = shalt.err (!%p1043_p0)
}
  0x32   : > { %s1047_s7 = scalar_lea.vmem %s1252_s22, 2048  ;;  %s1135_s10 = smov [#allocation2]  }
  0x33   : > { %p1048_p1 = scmp.ne.s32.totalorder %s1252_s22, %s1047_s7  ;;  %s1052_s11 = sshll.u32 %s1135_s10, 4  ;;  %s1053_s11 = int_to_ptr.vmem [resolvable:$false] %s1052_s11 }
  0x34   : > { %s1054_s21 = scalar_lea.vmem %s1053_s11, 4096  ;;  %p1055_p2 = scmp.lt.s32.totalorder %s1252_s22, %s1053_s11 }
  0x35   : > { %p1050_p6 = pnand %p1048_p1, %p1036_p7  ;;  %p1056_p3 = scmp.lt.s32.totalorder %s1054_s21, %s1047_s7 }
  0x37   : > { %p1051_p5 = pneg %p1050_p6  ;;  %p1057_p4 = por %p1056_p3, %p1055_p2 }
  0x39   : > { %p1058_p8 = pnand %p1057_p4, %p1051_p5 }
  0x3b   : > { %1061 = shalt.err (!%p1058_p8)
}
  0x3c   : > { %938 = dma.hbm_to_vmem [thread:$0]  (!%p1248_p11), %s1246_s17, 2048, %s1252_s22, %s1254_s25, %s1133_s28, %s1133_s28, %s1134_s29  }
  0x3d   : > { %p1448_p1 = scmp.ne.s32.totalorder %s1443_s20, 0 }
  0x3e   : > { %s1281_s26 = sand.u32 (!%p1448_p1), 1, %s1122_s13   ;;  %p1449_p4 = scmp.ne.s32.totalorder (!%p1448_p1), %s1441_s18, 0 }
  0x3f   : > { %171 = sbr.rel (%p1448_p1) target bundleno = 348 (0x15c), region = 32  ;;  %s800_s27 = sshll.u32 (!%p1448_p1), %s1281_s26, 7 }
  0x40   : > { %s174_s30 = scalar_lea.sflag (!%p1448_p1), [#allocation3], %s1281_s26  ;;  %s1285_s4 = scalar_lea.vmem (!%p1448_p1), [#allocation2], %s800_s27 }
  0x44   : > { %1105 = dma.done.wait (%p1449_p4), %s174_s30, 2048  }
  0x45   : > { %1107 = vsyncadd (%p1449_p4), %s174_s30, 4294965248  ;;  %p1450_p6 = scmp.eq.s32.totalorder %s1180_s16, 0 }
  0x47   : > { %1109 = dma.done.wait (%p1450_p6), [#allocation6], 1024   ;;  %p1451_p8 = pmov %p1450_p6 }
  0x48   : > { %v984_v0 = vld [vmem:[#allocation5 + $0x38] sm:$0xff]   ;;  %v985_v1 = vld [vmem:[#allocation5 + $0x30] sm:$0xff]   ;;  %v986_v2 = vld [vmem:[#allocation5 + $0x28] sm:$0xff]   ;;  %s802_s28 = sshll.u32 %s1281_s26, 8  ;;  %s834_s17 = sshll.u32 %s1180_s16, 12 }
  0x49   : > { %1111 = vsyncadd (%p1451_p8), [#allocation6], 4294966272  ;;  %859 = vmatprep.subr.bf16.mxu0 %v984_v0  ;;  %907 = vmatprep.subr.bf16.mxu1 %v984_v0  ;;  %v987_v3 = vld [vmem:[#allocation5 + $0x20] sm:$0xff]   ;;  %v988_v6 = vld [vmem:[#allocation5 + $0x18] sm:$0xff]   ;;  %s1323_s29 = scalar_lea.vmem [#allocation7], %s802_s28  ;;  %s1386_s25 = scalar_lea.hbm %s1436_s3, %s834_s17 }
  0x4a   : > { %860 = vmatpush3.bf16.msra.mxu0 %v984_v0  ;;  %915 = vmatpush3.bf16.msra.mxu1 %v984_v0  ;;  %v992_v4 = vld [vmem:[%s1285_s4] sm:$0xff]   ;;  %v989_v7 = vld [vmem:[#allocation5 + $0x10] sm:$0xff]   ;;  %v990_v8 = vld [vmem:[#allocation5 + $0x8] sm:$0xff]   ;;  %s709_s22 = sshll.u32 %s1323_s29, 4  ;;  %s696_s8 = scalar_lea.sflag [#allocation4], %s1281_s26  ;;  %s1388_s22 = int_to_ptr.vmem [resolvable:$true] %s709_s22 }
  0x4b   : > { %861 = vmatprep.subr.bf16.mxu0 %v985_v1  ;;  %908 = vmatprep.subr.bf16.mxu1 %v985_v1  ;;  %v993_v5 = vld [vmem:[%s1285_s4 + $0x40] sm:$0xff]   ;;  %v994_v10 = vld [vmem:[%s1285_s4 + $0x8] sm:$0xff]   ;;  %v996_v12 = vld [vmem:[%s1285_s4 + $0x10] sm:$0xff]   ;;  %s1062_s9 = scalar_lea.vmem %s1388_s22, 4096  ;;  %p1452_p11 = scmp.ne.s32.totalorder %s1446_s6, 0 }
  0x4c   : > { %875 = vmatprep.mubr.bf16.mxu0 %v992_v4  ;;  %891 = vmatprep.mubr.bf16.mxu1 %v993_v5  ;;  %v991_v9 = vld [vmem:[#allocation5] sm:$0xff]   ;;  %v995_v11 = vld [vmem:[%s1285_s4 + $0x48] sm:$0xff]   ;;  %v997_v13 = vld [vmem:[%s1285_s4 + $0x50] sm:$0xff]   ;;  %p1063_p3 = scmp.ne.s32.totalorder %s1388_s22, %s1062_s9  ;;  %s1136_s7 = smov [#allocation7]  }
  0x4d   : > { %v998_v14 = vld [vmem:[%s1285_s4 + $0x18] sm:$0xff]   ;;  %v1000_v16 = vld [vmem:[%s1285_s4 + $0x20] sm:$0xff]   ;;  %v1002_v18 = vld [vmem:[%s1285_s4 + $0x28] sm:$0xff]   ;;  %s1066_s10 = sshll.u32 %s1136_s7, 4  ;;  %s1067_s10 = int_to_ptr.vmem [resolvable:$false] %s1066_s10 }
  0x4e   : > { %862 = vmatpush3.bf16.msra.mxu0 %v985_v1  ;;  %916 = vmatpush3.bf16.msra.mxu1 %v985_v1  ;;  %v999_v15 = vld [vmem:[%s1285_s4 + $0x58] sm:$0xff]   ;;  %v1001_v17 = vld [vmem:[%s1285_s4 + $0x60] sm:$0xff]   ;;  %v1003_v19 = vld [vmem:[%s1285_s4 + $0x68] sm:$0xff]   ;;  %p1064_p7 = pnand %p1063_p3, %p1452_p11  ;;  %s1068_s11 = scalar_lea.vmem %s1067_s10, 8192 }
  0x4f   : > { %863 = vmatprep.subr.bf16.mxu0 %v986_v2  ;;  %909 = vmatprep.subr.bf16.mxu1 %v986_v2  ;;  %v1004_v20 = vld [vmem:[%s1285_s4 + $0x30] sm:$0xff]   ;;  %v1006_v22 = vld [vmem:[%s1285_s4 + $0x38] sm:$0xff]   ;;  %v1314_v24 = vld [vmem:[%s1435_s2] ss:$0 sm:$0xff]  ;;  %p1069_p10 = scmp.lt.s32.totalorder %s1388_s22, %s1067_s10  ;;  %p1070_p12 = scmp.lt.s32.totalorder %s1068_s11, %s1062_s9 }
  0x50   : > { %v1005_v21 = vld [vmem:[%s1285_s4 + $0x70] sm:$0xff]   ;;  %v1007_v23 = vld [vmem:[%s1285_s4 + $0x78] sm:$0xff]   ;;  %p1065_p9 = pneg %p1064_p7 }
  0x51   : > { %p1071_p13 = por %p1070_p12, %p1069_p10 }
  0x52   : > { %864 = vmatpush3.bf16.msra.mxu0 %v986_v2  ;;  %917 = vmatpush3.bf16.msra.mxu1 %v986_v2 }
  0x53   : > { %865 = vmatprep.subr.bf16.mxu0 %v987_v3  ;;  %910 = vmatprep.subr.bf16.mxu1 %v987_v3  ;;  %p1072_p0 = pnand %p1071_p13, %p1065_p9 }
  0x56   : > { %866 = vmatpush3.bf16.msra.mxu0 %v987_v3  ;;  %918 = vmatpush3.bf16.msra.mxu1 %v987_v3 }
  0x57   : > { %867 = vmatprep.subr.bf16.mxu0 %v988_v6  ;;  %911 = vmatprep.subr.bf16.mxu1 %v988_v6 }
  0x5a   : > { %868 = vmatpush3.bf16.msra.mxu0 %v988_v6  ;;  %919 = vmatpush3.bf16.msra.mxu1 %v988_v6 }
  0x5b   : > { %869 = vmatprep.subr.bf16.mxu0 %v989_v7  ;;  %912 = vmatprep.subr.bf16.mxu1 %v989_v7 }
  0x5e   : > { %870 = vmatpush3.bf16.msra.mxu0 %v989_v7  ;;  %920 = vmatpush3.bf16.msra.mxu1 %v989_v7 }
  0x5f   : > { %871 = vmatprep.subr.bf16.mxu0 %v990_v8  ;;  %913 = vmatprep.subr.bf16.mxu1 %v990_v8 }
  0x62   : > { %872 = vmatpush3.bf16.msra.mxu0 %v990_v8  ;;  %921 = vmatpush3.bf16.msra.mxu1 %v990_v8 }
  0x63   : > { %873 = vmatprep.subr.bf16.mxu0 %v991_v9  ;;  %914 = vmatprep.subr.bf16.mxu1 %v991_v9 }
  0x66   : > { %874 = vmatpush3.bf16.msra.mxu0 %v991_v9  ;;  %922 = vmatpush3.bf16.msra.mxu1 %v991_v9 }
  0x69   : > { %876 = vmatmul.mubr.bf16.vlgmr.msra.gmra.mxu0 %v994_v10  ;;  %892 = vmatmul.mubr.bf16.vlgmr.msra.gmra.mxu1 %v995_v11 }
  0x6a   : > { %879 = vmatprep.mubr.bf16.mxu0 %v996_v12  ;;  %895 = vmatprep.mubr.bf16.mxu1 %v997_v13 }
  0x71   : > { %880 = vmatmul.mubr.bf16.gmra.mxu0 %v998_v14  ;;  %896 = vmatmul.mubr.bf16.gmra.mxu1 %v999_v15 }
  0x72   : > { %883 = vmatprep.mubr.bf16.mxu0 %v1000_v16  ;;  %899 = vmatprep.mubr.bf16.mxu1 %v1001_v17 }
  0x79   : > { %884 = vmatmul.mubr.bf16.gmra.mxu0 %v1002_v18  ;;  %900 = vmatmul.mubr.bf16.gmra.mxu1 %v1003_v19 }
  0x7a   : > { %887 = vmatprep.mubr.bf16.mxu0 %v1004_v20  ;;  %903 = vmatprep.mubr.bf16.mxu1 %v1005_v21 }
  0x81   : > { %888 = vmatmul.mubr.bf16.gmra.mxu0 %v1006_v22  ;;  %904 = vmatmul.mubr.bf16.gmra.mxu1 %v1007_v23 }
 0x129   : > { %v877_v25 = vpop.f32.mrf.mxu0  ;;  %v893_v26 = vpop.f32.mrf.mxu1 }
 0x12a   : > { %v449_v27 = vadd.f32 %v877_v25, %v1314_v24  ;;  %v513_v28 = vadd.f32 %v893_v26, %v1314_v24 }
 0x12b   : > { %v440_v29 = vpop.f32.mrf.mxu0  ;;  %v504_v30 = vpop.f32.mrf.mxu1 }
 0x12c   : > { %vm569_vm0 = vcmp.gt.f32.partialorder %v449_v27, 0.0  ;;  %v601_v31 = vmul.f32 0.1, %v449_v27  ;;  %vm585_vm1 = vcmp.gt.f32.partialorder %v513_v28, 0.0  ;;  %v617_v32 = vmul.f32 0.1, %v513_v28 }
 0x12d   : > { %v441_v33 = vadd.f32 %v1314_v24, %v440_v29  ;;  %v505_v34 = vadd.f32 %v1314_v24, %v504_v30  ;;  %v878_v35 = vpop.f32.mrf.mxu0  ;;  %v894_v36 = vpop.f32.mrf.mxu1 }
 0x12e   : > { %v633_v37 = vsel %vm569_vm0, %v449_v27, %v601_v31  ;;  %v649_v38 = vsel %vm585_vm1, %v513_v28, %v617_v32  ;;  %v452_v39 = vadd.f32 %v878_v35, %v1314_v24  ;;  %v516_v40 = vadd.f32 %v894_v36, %v1314_v24 }
 0x12f   : > { %665 = vst [vmem:[%s1323_s29 + $0x10] sm:$0xff] %v633_v37  ;;  %681 = vst [vmem:[%s1323_s29 + $0x90] sm:$0xff] %v649_v38  ;;  %vm567_vm2 = vcmp.gt.f32.partialorder %v441_v33, 0.0  ;;  %v599_v41 = vmul.f32 0.1, %v441_v33  ;;  %vm583_vm3 = vcmp.gt.f32.partialorder %v505_v34, 0.0  ;;  %v443_v43 = vpop.f32.mrf.mxu0  ;;  %v507_v44 = vpop.f32.mrf.mxu1 }
 0x130   : > { %v615_v42 = vmul.f32 0.1, %v505_v34  ;;  %vm570_vm4 = vcmp.gt.f32.partialorder %v452_v39, 0.0  ;;  %v602_v45 = vmul.f32 0.1, %v452_v39  ;;  %vm586_vm5 = vcmp.gt.f32.partialorder %v516_v40, 0.0 }
 0x131   : > { %v618_v46 = vmul.f32 0.1, %v516_v40  ;;  %v631_v47 = vsel %vm567_vm2, %v441_v33, %v599_v41  ;;  %v444_v49 = vadd.f32 %v1314_v24, %v443_v43  ;;  %v508_v50 = vadd.f32 %v1314_v24, %v507_v44  ;;  %v881_v51 = vpop.f32.mrf.mxu0  ;;  %v897_v52 = vpop.f32.mrf.mxu1 }
 0x132   : > { %v647_v48 = vsel %vm583_vm3, %v505_v34, %v615_v42  ;;  %663 = vst [vmem:[%s1323_s29] sm:$0xff] %v631_v47  ;;  %v634_v53 = vsel %vm570_vm4, %v452_v39, %v602_v45  ;;  %v465_v55 = vadd.f32 %v881_v51, %v1314_v24  ;;  %v529_v56 = vadd.f32 %v897_v52, %v1314_v24 }
 0x133   : > { %679 = vst [vmem:[%s1323_s29 + $0x80] sm:$0xff] %v647_v48  ;;  %v650_v54 = vsel %vm586_vm5, %v516_v40, %v618_v46  ;;  %666 = vst [vmem:[%s1323_s29 + $0x18] sm:$0xff] %v634_v53  ;;  %vm568_vm6 = vcmp.gt.f32.partialorder %v444_v49, 0.0  ;;  %v600_v57 = vmul.f32 0.1, %v444_v49  ;;  %vm584_vm7 = vcmp.gt.f32.partialorder %v508_v50, 0.0  ;;  %v456_v59 = vpop.f32.mrf.mxu0  ;;  %v520_v60 = vpop.f32.mrf.mxu1 }
 0x134   : > { %682 = vst [vmem:[%s1323_s29 + $0x98] sm:$0xff] %v650_v54  ;;  %v616_v58 = vmul.f32 0.1, %v508_v50  ;;  %vm573_vm8 = vcmp.gt.f32.partialorder %v465_v55, 0.0  ;;  %v605_v61 = vmul.f32 0.1, %v465_v55  ;;  %v457_v1 = vadd.f32 %v1314_v24, %v456_v59 }
 0x135   : > { %vm589_vm9 = vcmp.gt.f32.partialorder %v529_v56, 0.0  ;;  %v621_v62 = vmul.f32 0.1, %v529_v56  ;;  %v632_v63 = vsel %vm568_vm6, %v444_v49, %v600_v57  ;;  %v521_v2 = vadd.f32 %v1314_v24, %v520_v60  ;;  %v882_v3 = vpop.f32.mrf.mxu0  ;;  %v898_v4 = vpop.f32.mrf.mxu1 }
 0x136   : > { %v648_v0 = vsel %vm584_vm7, %v508_v50, %v616_v58  ;;  %664 = vst [vmem:[%s1323_s29 + $0x8] sm:$0xff] %v632_v63  ;;  %v637_v5 = vsel %vm573_vm8, %v465_v55, %v605_v61  ;;  %v468_v7 = vadd.f32 %v882_v3, %v1314_v24  ;;  %v532_v8 = vadd.f32 %v898_v4, %v1314_v24 }
 0x137   : > { %680 = vst [vmem:[%s1323_s29 + $0x88] sm:$0xff] %v648_v0  ;;  %v653_v6 = vsel %vm589_vm9, %v529_v56, %v621_v62  ;;  %669 = vst [vmem:[%s1323_s29 + $0x30] sm:$0xff] %v637_v5  ;;  %vm571_vm10 = vcmp.gt.f32.partialorder %v457_v1, 0.0  ;;  %v603_v9 = vmul.f32 0.1, %v457_v1  ;;  %vm587_vm11 = vcmp.gt.f32.partialorder %v521_v2, 0.0  ;;  %v459_v11 = vpop.f32.mrf.mxu0  ;;  %v523_v12 = vpop.f32.mrf.mxu1 }
 0x138   : > { %685 = vst [vmem:[%s1323_s29 + $0xb0] sm:$0xff] %v653_v6  ;;  %v619_v10 = vmul.f32 0.1, %v521_v2  ;;  %vm574_vm12 = vcmp.gt.f32.partialorder %v468_v7, 0.0  ;;  %v606_v13 = vmul.f32 0.1, %v468_v7  ;;  %v460_v17 = vadd.f32 %v1314_v24, %v459_v11 }
 0x139   : > { %vm590_vm13 = vcmp.gt.f32.partialorder %v532_v8, 0.0  ;;  %v622_v14 = vmul.f32 0.1, %v532_v8  ;;  %v635_v15 = vsel %vm571_vm10, %v457_v1, %v603_v9  ;;  %v524_v18 = vadd.f32 %v1314_v24, %v523_v12  ;;  %v885_v19 = vpop.f32.mrf.mxu0  ;;  %v901_v20 = vpop.f32.mrf.mxu1 }
 0x13a   : > { %v651_v16 = vsel %vm587_vm11, %v521_v2, %v619_v10  ;;  %667 = vst [vmem:[%s1323_s29 + $0x20] sm:$0xff] %v635_v15  ;;  %v638_v21 = vsel %vm574_vm12, %v468_v7, %v606_v13  ;;  %v481_v23 = vadd.f32 %v885_v19, %v1314_v24  ;;  %v545_v25 = vadd.f32 %v901_v20, %v1314_v24 }
 0x13b   : > { %683 = vst [vmem:[%s1323_s29 + $0xa0] sm:$0xff] %v651_v16  ;;  %v654_v22 = vsel %vm590_vm13, %v532_v8, %v622_v14  ;;  %670 = vst [vmem:[%s1323_s29 + $0x38] sm:$0xff] %v638_v21  ;;  %vm572_vm14 = vcmp.gt.f32.partialorder %v460_v17, 0.0  ;;  %v604_v26 = vmul.f32 0.1, %v460_v17  ;;  %vm588_vm15 = vcmp.gt.f32.partialorder %v524_v18, 0.0  ;;  %v472_v28 = vpop.f32.mrf.mxu0  ;;  %v536_v29 = vpop.f32.mrf.mxu1 }
 0x13c   : > { %686 = vst [vmem:[%s1323_s29 + $0xb8] sm:$0xff] %v654_v22  ;;  %v620_v27 = vmul.f32 0.1, %v524_v18  ;;  %vm577_vm0 = vcmp.gt.f32.partialorder %v481_v23, 0.0  ;;  %v609_v30 = vmul.f32 0.1, %v481_v23  ;;  %v473_v34 = vadd.f32 %v1314_v24, %v472_v28 }
 0x13d   : > { %vm593_vm1 = vcmp.gt.f32.partialorder %v545_v25, 0.0  ;;  %v625_v31 = vmul.f32 0.1, %v545_v25  ;;  %v636_v32 = vsel %vm572_vm14, %v460_v17, %v604_v26  ;;  %v537_v35 = vadd.f32 %v1314_v24, %v536_v29  ;;  %v886_v36 = vpop.f32.mrf.mxu0  ;;  %v902_v37 = vpop.f32.mrf.mxu1 }
 0x13e   : > { %v652_v33 = vsel %vm588_vm15, %v524_v18, %v620_v27  ;;  %668 = vst [vmem:[%s1323_s29 + $0x28] sm:$0xff] %v636_v32  ;;  %v641_v38 = vsel %vm577_vm0, %v481_v23, %v609_v30  ;;  %v484_v40 = vadd.f32 %v886_v36, %v1314_v24  ;;  %v548_v41 = vadd.f32 %v902_v37, %v1314_v24 }
 0x13f   : > { %684 = vst [vmem:[%s1323_s29 + $0xa8] sm:$0xff] %v652_v33  ;;  %v657_v39 = vsel %vm593_vm1, %v545_v25, %v625_v31  ;;  %673 = vst [vmem:[%s1323_s29 + $0x50] sm:$0xff] %v641_v38  ;;  %vm575_vm2 = vcmp.gt.f32.partialorder %v473_v34, 0.0  ;;  %v607_v42 = vmul.f32 0.1, %v473_v34  ;;  %vm591_vm3 = vcmp.gt.f32.partialorder %v537_v35, 0.0  ;;  %v475_v44 = vpop.f32.mrf.mxu0  ;;  %v539_v45 = vpop.f32.mrf.mxu1 }
 0x140   : > { %689 = vst [vmem:[%s1323_s29 + $0xd0] sm:$0xff] %v657_v39  ;;  %v623_v43 = vmul.f32 0.1, %v537_v35  ;;  %vm578_vm4 = vcmp.gt.f32.partialorder %v484_v40, 0.0  ;;  %v610_v46 = vmul.f32 0.1, %v484_v40  ;;  %v476_v50 = vadd.f32 %v1314_v24, %v475_v44 }
 0x141   : > { %vm594_vm5 = vcmp.gt.f32.partialorder %v548_v41, 0.0  ;;  %v626_v47 = vmul.f32 0.1, %v548_v41  ;;  %v639_v48 = vsel %vm575_vm2, %v473_v34, %v607_v42  ;;  %v540_v51 = vadd.f32 %v1314_v24, %v539_v45  ;;  %v889_v52 = vpop.f32.mrf.mxu0  ;;  %v905_v53 = vpop.f32.mrf.mxu1 }
 0x142   : > { %v655_v49 = vsel %vm591_vm3, %v537_v35, %v623_v43  ;;  %671 = vst [vmem:[%s1323_s29 + $0x40] sm:$0xff] %v639_v48  ;;  %v642_v54 = vsel %vm578_vm4, %v484_v40, %v610_v46  ;;  %v497_v56 = vadd.f32 %v889_v52, %v1314_v24  ;;  %v561_v57 = vadd.f32 %v905_v53, %v1314_v24 }
 0x143   : > { %687 = vst [vmem:[%s1323_s29 + $0xc0] sm:$0xff] %v655_v49  ;;  %v658_v55 = vsel %vm594_vm5, %v548_v41, %v626_v47  ;;  %674 = vst [vmem:[%s1323_s29 + $0x58] sm:$0xff] %v642_v54  ;;  %vm576_vm6 = vcmp.gt.f32.partialorder %v476_v50, 0.0  ;;  %v608_v58 = vmul.f32 0.1, %v476_v50  ;;  %vm592_vm7 = vcmp.gt.f32.partialorder %v540_v51, 0.0  ;;  %v488_v60 = vpop.f32.mrf.mxu0  ;;  %v552_v61 = vpop.f32.mrf.mxu1 }
 0x144   : > { %690 = vst [vmem:[%s1323_s29 + $0xd8] sm:$0xff] %v658_v55  ;;  %v624_v59 = vmul.f32 0.1, %v540_v51  ;;  %vm581_vm8 = vcmp.gt.f32.partialorder %v497_v56, 0.0  ;;  %v613_v62 = vmul.f32 0.1, %v497_v56  ;;  %v489_v2 = vadd.f32 %v1314_v24, %v488_v60 }
 0x145   : > { %vm597_vm9 = vcmp.gt.f32.partialorder %v561_v57, 0.0  ;;  %v629_v63 = vmul.f32 0.1, %v561_v57  ;;  %v640_v0 = vsel %vm576_vm6, %v476_v50, %v608_v58  ;;  %v553_v3 = vadd.f32 %v1314_v24, %v552_v61  ;;  %v890_v4 = vpop.f32.mrf.mxu0  ;;  %v906_v5 = vpop.f32.mrf.mxu1 }
 0x146   : > { %v656_v1 = vsel %vm592_vm7, %v540_v51, %v624_v59  ;;  %672 = vst [vmem:[%s1323_s29 + $0x48] sm:$0xff] %v640_v0  ;;  %v645_v6 = vsel %vm581_vm8, %v497_v56, %v613_v62  ;;  %v500_v8 = vadd.f32 %v890_v4, %v1314_v24  ;;  %v564_v9 = vadd.f32 %v906_v5, %v1314_v24 }
 0x147   : > { %688 = vst [vmem:[%s1323_s29 + $0xc8] sm:$0xff] %v656_v1  ;;  %v661_v7 = vsel %vm597_vm9, %v561_v57, %v629_v63  ;;  %677 = vst [vmem:[%s1323_s29 + $0x70] sm:$0xff] %v645_v6  ;;  %vm579_vm10 = vcmp.gt.f32.partialorder %v489_v2, 0.0  ;;  %v611_v10 = vmul.f32 0.1, %v489_v2  ;;  %vm595_vm11 = vcmp.gt.f32.partialorder %v553_v3, 0.0  ;;  %v491_v12 = vpop.f32.mrf.mxu0  ;;  %v555_v13 = vpop.f32.mrf.mxu1 }
 0x148   : > { %693 = vst [vmem:[%s1323_s29 + $0xf0] sm:$0xff] %v661_v7  ;;  %v627_v11 = vmul.f32 0.1, %v553_v3  ;;  %vm582_vm12 = vcmp.gt.f32.partialorder %v500_v8, 0.0  ;;  %v614_v14 = vmul.f32 0.1, %v500_v8  ;;  %v492_v18 = vadd.f32 %v1314_v24, %v491_v12 }
 0x149   : > { %vm598_vm13 = vcmp.gt.f32.partialorder %v564_v9, 0.0  ;;  %v630_v15 = vmul.f32 0.1, %v564_v9  ;;  %v643_v16 = vsel %vm579_vm10, %v489_v2, %v611_v10  ;;  %v556_v19 = vadd.f32 %v1314_v24, %v555_v13 }
 0x14a   : > { %v659_v17 = vsel %vm595_vm11, %v553_v3, %v627_v11  ;;  %675 = vst [vmem:[%s1323_s29 + $0x60] sm:$0xff] %v643_v16  ;;  %v646_v20 = vsel %vm582_vm12, %v500_v8, %v614_v14  ;;  %vm580_vm14 = vcmp.gt.f32.partialorder %v492_v18, 0.0  ;;  %v612_v22 = vmul.f32 0.1, %v492_v18 }
 0x14b   : > { %691 = vst [vmem:[%s1323_s29 + $0xe0] sm:$0xff] %v659_v17  ;;  %v662_v21 = vsel %vm598_vm13, %v564_v9, %v630_v15  ;;  %678 = vst [vmem:[%s1323_s29 + $0x78] sm:$0xff] %v646_v20  ;;  %vm596_vm15 = vcmp.gt.f32.partialorder %v556_v19, 0.0  ;;  %v628_v23 = vmul.f32 0.1, %v556_v19 }
 0x14c   : > { %694 = vst [vmem:[%s1323_s29 + $0xf8] sm:$0xff] %v662_v21  ;;  %v644_v24 = vsel %vm580_vm14, %v492_v18, %v612_v22 }
 0x14d   : > { %v660_v25 = vsel %vm596_vm15, %v556_v19, %v628_v23  ;;  %676 = vst [vmem:[%s1323_s29 + $0x68] sm:$0xff] %v644_v24 }
 0x14e   : > { %692 = vst [vmem:[%s1323_s29 + $0xe8] sm:$0xff] %v660_v25 }
 0x14f   : > { %1075 = shalt.err (!%p1072_p0)
}
 0x150   : > { %s1076_s21 = scalar_lea.hbm %s1386_s25, 4096  ;;  %s1080_s4 = scalar_lea.hbm %s1436_s3, 8192 }
 0x151   : > { %p1077_p5 = scmp.ne.s32.totalorder %s1386_s25, %s1076_s21  ;;  %p1081_p4 = scmp.lt.s32.totalorder %s1386_s25, %s1436_s3 }
 0x152   : > { %p1082_p6 = scmp.lt.s32.totalorder %s1080_s4, %s1076_s21 }
 0x153   : > { %p1078_p2 = pnand %p1077_p5, %p1452_p11 }
 0x154   : > { %p1083_p8 = por %p1082_p6, %p1081_p4 }
 0x155   : > { %p1079_p1 = pneg %p1078_p2 }
 0x157   : > { %p1084_p3 = pnand %p1083_p8, %p1079_p1 }
 0x159   : > { %1087 = shalt.err (!%p1084_p3)
}
 0x15a   : > { %s1137_s28 = smov 128   ;;  %s1138_s29 = smov 8  }
 0x15b   : > { %929 = dma.vmem_to_hbm [thread:$0]  (%p1452_p11), %s1388_s22, 4096, %s1386_s25, %s696_s8, %s1137_s28, %s1137_s28, %s1138_s29  }
 0x15c PF: > { %s724_s17 = sand.u32 1, %s1118_s12   ;;  %p1453_p7 = scmp.ne.s32.totalorder %s1442_s19, 0 }
 0x15d   : > { %p1454_p9 = scmp.ge.s32.totalorder %s1130_s15, 2  ;;  %s725_s16 = scalar_lea.sflag [#allocation4], %s724_s17 }
 0x15f   : > { %p940_p10 = pnand %p1454_p9, %p1453_p7 }
 0x161   : > { %p941_p12 = pneg %p940_p10 }
 0x163   : > { %1113 = dma.done.wait (%p941_p12), %s725_s16, 4096  }
 0x164   : > { %1115 = vsyncadd (%p941_p12), %s725_s16, 4294963200  ;;  %p17_p13 = scmp.ge.s32.totalorder %s1213_s24, 4   ;;  %s1455_s12 = smov %s1122_s13 }
 0x165   : > { %s1456_s13 = smov %s1126_s14  ;;  %s1457_s14 = smov %s1233_s5 }
 0x166   : > { %s1458_s15 = smov %s1213_s24  ;;  %19 = sbr.rel (!%p17_p13) target bundleno = 6 (0x6), region = 81 }
 0x16b   :  { %730 = vsyncpa [#allocation3], 1 }
 0x16c   :  { %732 = vsyncpa [#allocation3 + $0x1], 1 }
 0x16d   :  { %733 = vsyncpa [#allocation6], 1 }
 0x16e   :  { %734 = vsyncpa [#allocation4], 1 }
 0x16f   :  { %736 = vsyncpa [#allocation4 + $0x1], 1 }

</bundles_post_ra>
